<compile_context>
chip_gen: v5e
topology: v5e:2x2
jax: 0.10.0
libtpu: 0.0.40
codegen_flags: <defaults>
</compile_context>

<pallas_src>
import numpy as np
import jax
import jax.numpy as jnp
from jax.experimental import pallas as pl
from jax.experimental.pallas import tpu as pltpu


# ----------------------------------------------------------------------------
# Bicubic taps (identical to the PyTorch module).
# ----------------------------------------------------------------------------
def _bicubic_tap(x, a=-0.5):
    ax = abs(float(x))
    if ax <= 1.0:
        return (a + 2.0) * ax**3 - (a + 3.0) * ax**2 + 1.0
    elif 1.0 < ax < 2.0:
        return a * ax**3 - 5.0 * a * ax**2 + 8.0 * a * ax - 4.0 * a
    else:
        return 0.0


def _bicubic_kernel_1d(factor):
    size = factor * 4
    k = np.array(
        [_bicubic_tap((i - np.floor(size / 2) + 0.5) / factor) for i in range(size)],
        dtype=np.float32,
    )
    return k / k.sum()


def _padded_to_src(q, pad_before, n, padding):
    """Map a padded-coordinate index back to the unpadded source index."""
    i = q - pad_before
    if padding == "reflect":          # torch/np reflect: no edge repeat
        if i < 0:
            i = -i
        elif i >= n:
            i = 2 * (n - 1) - i
    elif padding == "replicate":      # clamp to edge
        i = min(max(i, 0), n - 1)
    else:
        raise NotImplementedError(f"padding mode {padding!r} not supported")
    assert 0 <= i < n, (q, pad_before, n)
    return i


def _build_tap_matrices(H, W, factor, padding):
    """A: (H_out, H) left tap matrix; B: (W, W_out) right tap matrix.

    Padding is folded in (border taps accumulated onto mirrored interior
    indices), so the matrices act directly on the UNPADDED image.
    """
    size, stride = factor * 4, factor
    pad = max(size - stride, 0)
    pad_t = pad // 2
    pad_l = pad // 2
    H_out = (H + pad - size) // stride + 1
    W_out = (W + pad - size) // stride + 1
    k = _bicubic_kernel_1d(factor)

    B = np.zeros((W, W_out), dtype=np.float32)
    for ow in range(W_out):
        for j in range(size):
            B[_padded_to_src(ow * stride + j, pad_l, W, padding), ow] += k[j]

    A = np.zeros((H_out, H), dtype=np.float32)
    for oh in range(H_out):
        for i in range(size):
            A[oh, _padded_to_src(oh * stride + i, pad_t, H, padding)] += k[i]

    return A, B, H_out, W_out


# ----------------------------------------------------------------------------
# Fused Pallas kernel: one image per grid step, out = A @ (x @ B) in VMEM.
# ----------------------------------------------------------------------------
def _make_fused_kernel(compute_dtype):
    def kernel(x_ref, b_ref, a_ref, o_ref):
        # x_ref: (H, W) f32   b_ref: (W, W_out)   a_ref: (H_out, H)
        x = x_ref[...].astype(compute_dtype)          # in-kernel cast (VPU)
        t = jnp.dot(x, b_ref[...], preferred_element_type=jnp.float32)   # W pass
        o = jnp.dot(a_ref[...], t.astype(compute_dtype),                 # H pass
                    preferred_element_type=jnp.float32)
        o_ref[...] = o.astype(o_ref.dtype)
    return kernel


def _vmem_limit_bytes(H, W, H_out, W_out, tap_bytes):
    """Estimate the per-step VMEM working set; return a limit override or None."""
    est = (
        2 * H * W * 4                                  # double-buffered f32 input
        + 2 * H_out * W_out * 4                        # double-buffered f32 output
        + 2 * (W * W_out + H_out * H) * tap_bytes      # tap matrices (dbl-buffered)
        + H * W * tap_bytes                            # cast copy of x
        + H * W_out * (4 + tap_bytes)                  # pass-1 intermediate
        + H_out * W_out * 4                            # pass-2 result
    )
    if est <= 12 * 1024 * 1024:       # fits every generation's default scoped VMEM
        return None
    return min(int(est * 1.4) + (2 << 20), 56 * 1024 * 1024)


# ----------------------------------------------------------------------------
# Wrapper: BicubicDownSample.forward (nhwc=False, clip_round=False,
# byte_output=False).
# ----------------------------------------------------------------------------
def bicubic_downsample(x, factor=4, padding="reflect", compute_dtype=jnp.bfloat16):
    """x: (N, C, H, W) float. Returns (N, C, H//factor, W//factor) float32."""
    x = jnp.asarray(x, dtype=jnp.float32)
    N, C, H, W = x.shape
    size, stride = factor * 4, factor
    pad = max(size - stride, 0)
    pad_side = pad - pad // 2
    if padding == "reflect" and (H <= pad_side or W <= pad_side):
        raise ValueError(
            f"reflect padding needs spatial dims > {pad_side} for factor={factor}"
        )

    A_np, B_np, H_out, W_out = _build_tap_matrices(H, W, factor, padding)
    Ac = jnp.asarray(A_np, dtype=compute_dtype)
    Bc = jnp.asarray(B_np, dtype=compute_dtype)

    x3 = x.reshape(N * C, H, W)   # contiguous reshape (free)

    vmem_limit = _vmem_limit_bytes(H, W, H_out, W_out,
                                   jnp.dtype(compute_dtype).itemsize)

    out = pl.pallas_call(
        _make_fused_kernel(compute_dtype),
        out_shape=jax.ShapeDtypeStruct((N * C, H_out, W_out), jnp.float32),
        grid_spec=pltpu.PrefetchScalarGridSpec(
            num_scalar_prefetch=0,
            grid=(N * C,),
            in_specs=[
                # One image per step (leading dim squeezed out of the ref).
                pl.BlockSpec((None, H, W), lambda i: (i, 0, 0)),
                # Tap matrices: constant block index -> DMA'd once, never
                # re-fetched across grid steps.
                pl.BlockSpec((W, W_out), lambda i: (0, 0)),
                pl.BlockSpec((H_out, H), lambda i: (0, 0)),
            ],
            out_specs=pl.BlockSpec((None, H_out, W_out), lambda i: (i, 0, 0)),
        ),
        compiler_params=pltpu.CompilerParams(
            dimension_semantics=("parallel",),
            vmem_limit_bytes=vmem_limit,
        ),
    )(x3, Bc, Ac)

    return out.reshape(N, C, H_out, W_out)


# ----------------------------------------------------------------------------
# Pure-JAX f32 reference with the original module's structure (pad-H, conv-H,
# pad-W, conv-W) for verification.
# ----------------------------------------------------------------------------
def _reference(x, factor=4, padding="reflect"):
    x = x.astype(jnp.float32)
    N, C, H, W = x.shape
    size, stride = factor * 4, factor
    pad = size - stride
    pt, pb = pad // 2, pad - pad // 2
    k = jnp.asarray(_bicubic_kernel_1d(factor))

    # vertical pass (pad H only, conv along H)
    xh = jnp.pad(x, ((0, 0), (0, 0), (pt, pb), (0, 0)), mode=padding)
    H_out = (H + pad - size) // stride + 1
    tmp = jnp.stack(
        [jnp.einsum("i,ncit->nct", k, xh[:, :, oh * stride: oh * stride + size, :])
         for oh in range(H_out)],
        axis=2,
    )
    # horizontal pass (pad W only, conv along W)
    tw = jnp.pad(tmp, ((0, 0), (0, 0), (0, 0), (pt, pb)), mode=padding)
    W_out = (W + pad - size) // stride + 1
    out = jnp.stack(
        [jnp.einsum("j,nchj->nch", k, tw[:, :, :, ow * stride: ow * stride + size])
         for ow in range(W_out)],
        axis=3,
    )
    return out


if __name__ == "__main__":
    key = jax.random.PRNGKey(0)
    # groups=3 grouped conv in the module => 3 input channels (RGB image).
    x = jax.random.uniform(key, (2, 3, 16, 16), dtype=jnp.float32) * 255.0
    factor = 4

    ref = _reference(x, factor=factor)

    # Exact-structure check with f32 compute (tight tolerance).
    out_f32 = jax.block_until_ready(
        bicubic_downsample(x, factor=factor, compute_dtype=jnp.float32)
    )
    assert out_f32.shape == (2, 3, 16 // factor, 16 // factor), out_f32.shape
    np.testing.assert_allclose(np.asarray(out_f32), np.asarray(ref),
                               rtol=1e-5, atol=5e-4)

    # Default path: f32 input from HBM, bf16 MXU operands, f32 accumulation.
    # (0..255 image data quantized to bf16's ~8-bit mantissa -> ~0.5% error.)
    out_bf16 = jax.block_until_ready(bicubic_downsample(x, factor=factor))
    assert out_bf16.shape == ref.shape
    np.testing.assert_allclose(np.asarray(out_bf16), np.asarray(ref),
                               rtol=3e-2, atol=1.5)

    print("KERNEL_OK")
</pallas_src>

<mosaic_0001>
module attributes {stable_mosaic.version = 11 : i64} {
  func.func @kernel(%arg0: i32, %arg1: memref<1x16x16xf32, #tpu.memory_space<vmem>>, %arg2: memref<16x4xf32, #tpu.memory_space<vmem>>, %arg3: memref<4x16xf32, #tpu.memory_space<vmem>>, %arg4: memref<1x4x4xf32, #tpu.memory_space<vmem>>) attributes {dimension_semantics = [#tpu.dimension_semantics<parallel>], iteration_bounds = array<i64: 6>, scalar_prefetch = 0 : i64, scratch_operands = 0 : i64, tpu.core_type = #tpu.core_type<tc>, window_params = [{transform_indices = @transform_0, window_bounds = array<i64: 1, 16, 16>}, {pipeline_mode = #tpu.pipeline_mode<synchronous>, transform_indices = @transform_1, window_bounds = array<i64: 16, 4>}, {pipeline_mode = #tpu.pipeline_mode<synchronous>, transform_indices = @transform_2, window_bounds = array<i64: 4, 16>}, {transform_indices = @transform_3, window_bounds = array<i64: 1, 4, 4>}]} {
    %c0 = arith.constant 0 : index
    %c0_0 = arith.constant 0 : index
    %c0_1 = arith.constant 0 : index
    %0 = vector.load %arg1[%c0, %c0_0, %c0_1] : memref<1x16x16xf32, #tpu.memory_space<vmem>>, vector<1x16x16xf32>
    %1 = vector.shape_cast %0 : vector<1x16x16xf32> to vector<16x16xf32>
    %c0_2 = arith.constant 0 : index
    %c0_3 = arith.constant 0 : index
    %2 = vector.load %arg2[%c0_2, %c0_3] : memref<16x4xf32, #tpu.memory_space<vmem>>, vector<16x4xf32>
    %cst = arith.constant dense<0.000000e+00> : vector<16x4xf32>
    %3 = tpu.matmul %1, %2, %cst {dimension_numbers = #tpu.dot_dimension_numbers<[1], [0], [0], [1], [0, 0, 1, 1], [], []>} : vector<16x16xf32>, vector<16x4xf32>, vector<16x4xf32> -> vector<16x4xf32>
    %c0_4 = arith.constant 0 : index
    %c0_5 = arith.constant 0 : index
    %4 = vector.load %arg3[%c0_4, %c0_5] : memref<4x16xf32, #tpu.memory_space<vmem>>, vector<4x16xf32>
    %cst_6 = arith.constant dense<0.000000e+00> : vector<4x4xf32>
    %5 = tpu.matmul %4, %3, %cst_6 {dimension_numbers = #tpu.dot_dimension_numbers<[1], [0], [0], [1], [0, 0, 1, 1], [], []>} : vector<4x16xf32>, vector<16x4xf32>, vector<4x4xf32> -> vector<4x4xf32>
    %c0_7 = arith.constant 0 : index
    %c0_8 = arith.constant 0 : index
    %c0_9 = arith.constant 0 : index
    %6 = vector.load %arg4[%c0_7, %c0_8, %c0_9] : memref<1x4x4xf32, #tpu.memory_space<vmem>>, vector<1x4x4xf32>
    %7 = vector.shape_cast %6 : vector<1x4x4xf32> to vector<4x4xf32>
    %8 = vector.shape_cast %5 : vector<4x4xf32> to vector<1x4x4xf32>
    tpu.vector_store %arg4[%c0_7, %c0_8, %c0_9], %8 {strides = array<i32>} : memref<1x4x4xf32, #tpu.memory_space<vmem>>, vector<1x4x4xf32>,
    return
  }
  func.func @transform_0(%arg0: i32) -> (i32, i32, i32) {
    %c0_i32 = arith.constant 0 : i32
    %c0_i32_0 = arith.constant 0 : i32
    %c0_i32_1 = arith.constant 0 : i32
    return %arg0, %c0_i32, %c0_i32_0 : i32, i32, i32
  }
  func.func @transform_1(%arg0: i32) -> (i32, i32) {
    %c0_i32 = arith.constant 0 : i32
    %c0_i32_0 = arith.constant 0 : i32
    %c0_i32_1 = arith.constant 0 : i32
    return %c0_i32, %c0_i32_0 : i32, i32
  }
  func.func @transform_2(%arg0: i32) -> (i32, i32) {
    %c0_i32 = arith.constant 0 : i32
    %c0_i32_0 = arith.constant 0 : i32
    %c0_i32_1 = arith.constant 0 : i32
    return %c0_i32, %c0_i32_0 : i32, i32
  }
  func.func @transform_3(%arg0: i32) -> (i32, i32, i32) {
    %c0_i32 = arith.constant 0 : i32
    %c0_i32_0 = arith.constant 0 : i32
    %c0_i32_1 = arith.constant 0 : i32
    return %arg0, %c0_i32, %c0_i32_0 : i32, i32, i32
  }
}

</mosaic_0001>

<bundles_post_ra>
// kernel: tpu_custom_call.1
= control target key start
LH: loop header
LB: loop body
LE: loop exit
PB: predicated region body
PF: predicated region fallthrough
CT: control target
= control target key end

     0   :  { %8 = vsyncpa [#allocation3], 0  ;;  %s563_s0 = inlined_call_operand.hbm [shape: f32[6,16,16], index: 0, kind: input, shape index: {}]   ;;  %s564_s1 = inlined_call_operand.vmem [shape: f32[16,4], index: 1, kind: input, shape index: {}]   ;;  %s565_s2 = inlined_call_operand.vmem [shape: f32[4,16], index: 2, kind: input, shape index: {}]   ;;  %s566_s3 = inlined_call_operand.vmem [shape: f32[6,4,4], index: 3, kind: output, shape index: {}]  }
   0x1   :  { %10 = vsyncpa [#allocation3 + $0x1], 0  ;;  %s462_s12 = smov 0   ;;  %s464_s13 = smov 0  }
   0x2   :  { %s466_s14 = smov 0   ;;  %s468_s15 = smov 0  }
   0x3 LB: > { %s481_s16 = sadd.s32 4294967295, %s438_s15   ;;  %s484_s17 = sadd.s32 1, %s438_s15   ;;  %s438_s15 = sphi %s468_s15, %s573_s15   ;;  %s434_s14 = sphi %s466_s14, %s572_s14   ;;  %s430_s13 = sphi %s464_s13, %s571_s13   ;;  %s426_s12 = sphi %s462_s12, %s570_s12  }
   0x4   : > { %s20_s18 = ssub.s32 %s438_s15, %s484_s17  ;;  %s23_s19 = sadd.s32 1, %s434_s14 }
   0x5   : > { %p21_p0 = scmp.eq.s32.totalorder %s20_s18, 0  ;;  %p30_p1 = scmp.ne.s32.totalorder %s434_s14, %s430_s13 }
   0x6   : > { %p31_p2 = scmp.eq.s32.totalorder %s438_s15, 0  ;;  %p36_p3 = scmp.ne.s32.totalorder %s430_s13, %s426_s12 }
   0x7   : > { %s494_s20 = scalar_select %p21_p0, %s434_s14, %s23_s19  }
   0x8   : > { %p496_p4 = por %p31_p2, %p30_p1  ;;  %p37_p5 = scmp.eq.s32.totalorder %s481_s16, 0 }
   0x9   : > { %p339_p6 = scmp.lt.s32.totalorder %s438_s15, 6  ;;  %s134_s23 = sand.u32 1, %s434_s14  }
   0xa   : > { %p502_p7 = por %p37_p5, %p36_p3  ;;  %s319_s24 = sshll.u32 %s134_s23, 4 }
   0xb   : > { %s330_s25 = sshll.u32 %s438_s15, 4  ;;  %s138_s29 = scalar_lea.vmem [#allocation2], %s319_s24 }
   0xc   : > { %s143_s28 = scalar_lea.hbm %s563_s0, %s330_s25  ;;  %s146_s30 = sshll.u32 %s138_s29, 4  ;;  %s147_s30 = int_to_ptr.vmem [resolvable:$true] %s146_s30 }
   0xd   : > { %s144_s4 = sshll.u32 %s143_s28, 4  ;;  %p513_p8 = pnand %p339_p6, %p496_p4  ;;  %s145_s4 = int_to_ptr.hbm [resolvable:$true] %s144_s4 }
   0xe   : > { %p322_p9 = scmp.ge.s32.totalorder %s438_s15, 1  ;;  %s135_s6 = scalar_lea.sflag [#allocation3], %s134_s23 }
   0xf   : > { %s374_s7 = sshra.s32 %s145_s4, 4  ;;  %p378_p11 = pneg %p513_p8  ;;  %s375_s7 = int_to_ptr.hbm [resolvable:$true] %s374_s7 }
  0x10   : > { %s376_s8 = scalar_lea.hbm %s375_s7, 16  ;;  %s381_s11 = scalar_lea.hbm %s563_s0, 96 }
  0x11   : > { %p377_p10 = scmp.ne.s32.totalorder %s375_s7, %s376_s8  ;;  %p382_p0 = scmp.lt.s32.totalorder %s375_s7, %s563_s0 }
  0x12   : > { %p383_p1 = scmp.lt.s32.totalorder %s381_s11, %s376_s8 }
  0x13   : > { %p379_p12 = pnand %p378_p11, %p377_p10 }
  0x14   : > { %p384_p2 = por %p383_p1, %p382_p0 }
  0x15   : > { %p380_p13 = pneg %p379_p12 }
  0x17   : > { %p385_p3 = pnand %p384_p2, %p380_p13 }
  0x19   : > { %388 = shalt.err (!%p385_p3)
}
  0x1a   : > { %s440_s19 = smov 128   ;;  %s441_s21 = smov 8  }
  0x1b   : > { %338 = dma.hbm_to_vmem [thread:$0]  (!%p513_p8), %s145_s4, 256, %s147_s30, %s135_s6, %s440_s19, %s440_s19, %s441_s21  }
  0x1c   : > { %p154_p4 = scmp.lt.s32.totalorder %s438_s15, 7 }
  0x1e   : > { %p155_p5 = pnand %p322_p9, %p154_p4 }
  0x1f   : > { %s160_s23 = sand.u32 (!%p155_p5), 1, %s430_s13  }
  0x20   : > { %158 = sbr.rel (%p155_p5) target bundleno = 304 (0x130), region = 32  ;;  %s323_s24 = sshll.u32 (!%p155_p5), %s160_s23, 4 }
  0x21   : > { %s161_s25 = scalar_lea.sflag (!%p155_p5), [#allocation3], %s160_s23  ;;  %s164_s26 = scalar_lea.vmem (!%p155_p5), [#allocation2], %s323_s24 }
  0x25   : > { %421 = dma.done.wait (%p502_p7), %s161_s25, 256  }
  0x26   : > { %423 = vsyncadd (%p502_p7), %s161_s25, 4294967040  ;;  %v194_v0 = vld [vmem:[%s564_s1 + $0x8] sm:$0xff]  ;;  %v193_v1 = vld [vmem:[%s564_s1] sm:$0xff]  ;;  %vm195_vm0 = vcmask 130048   ;;  %p187_p6 = scmp.lt.s32.totalorder %s481_s16, 5  ;;  %vm249_vm1 = vcmask 27648  }
  0x27   : > { %331 = vmatpush.msra.mxu2 %v194_v0  ;;  %v192_v2 = vld [vmem:[%s164_s26 + $0x8] sm:$0xff]  ;;  %216 = vmatpush.msra.mxu0 %v194_v0  ;;  %v191_v3 = vld [vmem:[%s164_s26] sm:$0xff] }
  0x28   : > { %v225_v6 = vld [vmem:[%s565_s2] sm:$0xf]  ;;  %s575_s16 = smov (!%p187_p6, %s481_s16), 5 }
  0x29   : > { %332 = vmatpush.msra.mxu2 %v193_v1  ;;  %217 = vmatpush.msra.mxu0 %v193_v1  ;;  %s324_s4 = sshll.u32 %s575_s16, 2 }
  0x2a   : > { %326 = vmatmul.msk.f32.vlgmr.msra.gmra.mxu2 %vm195_vm0, %v192_v2  ;;  %325 = vmatmul.msk.f32.vlgmr.msra.gmra.mxu0 %vm195_vm0, %v191_v3  ;;  %s190_s7 = scalar_lea.vmem %s566_s3, %s324_s4 }
  0xa7   : > { %v219_v5 = vpop.f32.mrf.mxu0 }
  0xad   : > { %v222_v4 = vpop.f32.mrf.mxu2 }
  0xae   : > { %243 = vmatpush.msra.mxu1 %v222_v4 }
  0xb0   : > { %244 = vmatpush.msra.mxu1 %v219_v5 }
  0xb1   : > { %327 = vmatmul.msk.f32.vlgmr.msra.gmra.mxu1 %vm195_vm0, %v225_v6 }
 0x12e   : > { %v246_v7 = vpop.f32.mrf.mxu1 }
 0x12f   : > { %250 = vst.msk [vmem:[%s190_s7] sm:$0xf] %vm249_vm1, %v246_v7 }
 0x130 PF: > { %p13_p7 = scmp.ge.s32.totalorder %s484_s17, 8   ;;  %s570_s12 = smov %s430_s13 }
 0x131   : > { %s571_s13 = smov %s434_s14  ;;  %s572_s14 = smov %s494_s20 }
 0x132   : > { %s573_s15 = smov %s484_s17  ;;  %15 = sbr.rel (!%p13_p7) target bundleno = 3 (0x3), region = 72 }
 0x137   :  { %270 = vsyncpa [#allocation3], 1 }
 0x138   :  { %272 = vsyncpa [#allocation3 + $0x1], 1 }

</bundles_post_ra>
